<compile_context>
chip_gen: v5e
topology: v5e:2x2
jax: 0.10.0
libtpu: 0.0.40
codegen_flags: <defaults>
</compile_context>

<pallas_src>
import math

import jax
import jax.numpy as jnp
from jax import lax
from jax.experimental import pallas as pl
from jax.experimental.pallas import tpu as pltpu


def _make_kp_attention_kernel(act, scale):
    """act: 'softmax' | 'sigmoid'; scale: static python float or None."""

    def kernel(h_ref, f_ref, o_ref, p_ref):
        # h_ref: (TB, J, HWp)   heatmap block (invariant along the C-tile axis)
        # f_ref: (TB, TC, HWp)  feature block, native dtype
        # o_ref: (TB, TC, J)    output block
        # p_ref: (TB, J, HWp)   f32 scratch holding the normalized heatmap

        # Normalization does not depend on the channel tile: compute it once
        # per batch block (C-tile axis is 'arbitrary' => sequential, innermost).
        @pl.when(pl.program_id(1) == 0)
        def _():
            h = h_ref[...].astype(jnp.float32)
            if scale is not None:
                h = h * scale
            if act == "softmax":
                m = jnp.max(h, axis=-1, keepdims=True)
                e = jnp.exp(h - m)
                denom = jnp.sum(e, axis=-1, keepdims=True)
                # approx=True -> EUP vrcp slot; VALU keeps doing the sub/mul work.
                p_ref[...] = e * pl.reciprocal(denom, approx=True)
            elif act == "sigmoid":
                p_ref[...] = jax.nn.sigmoid(h)
            else:
                raise NotImplementedError(act)

        f = f_ref[...]                      # keep native dtype (no f32 upcast)
        p = p_ref[...].astype(f.dtype)
        # Contract over the lane-aligned spatial axis directly (no transpose):
        # (TB, TC, HWp) . (TB, J, HWp) -> (TB, TC, J), f32 accumulation on MXU.
        out = lax.dot_general(
            f, p,
            dimension_numbers=(((2,), (2,)), ((0,), (0,))),
            preferred_element_type=jnp.float32,
        )
        o_ref[...] = out.astype(o_ref.dtype)

    return kernel


def keypoint_attention(features, heatmaps, act="softmax", use_scale=False,
                       block_b=None, block_c=None):
    """features: (B, C, H, W), heatmaps: (B, J, H, W) -> (B, C, J)."""
    B, J, H, W = heatmaps.shape
    Bf, C, Hf, Wf = features.shape
    assert (Bf, Hf, Wf) == (B, H, W)
    HW = H * W
    HWp = ((HW + 127) // 128) * 128          # lane-align the spatial dim

    scale = (1.0 / math.sqrt(HW)) if use_scale else None

    h_flat = heatmaps.reshape(B, J, HW)
    f_flat = features.reshape(B, C, HW)
    if HWp != HW:
        pad = HWp - HW
        # -inf padding keeps softmax (exp -> 0) and sigmoid (-> 0) exact;
        # 0-padded features contribute nothing to the contraction.
        h_flat = jnp.pad(h_flat, ((0, 0), (0, 0), (0, pad)),
                         constant_values=-jnp.inf)
        f_flat = jnp.pad(f_flat, ((0, 0), (0, 0), (0, pad)))

    f_item = jnp.dtype(features.dtype).itemsize
    h_item = jnp.dtype(heatmaps.dtype).itemsize

    # --- tile-size heuristic --------------------------------------------------
    # Small problems: one grid step over everything (per-step overhead and tiny
    # DMAs dominate otherwise).  Large problems: one batch per step and a
    # channel tile sized to ~4 MiB so double-buffered blocks fit comfortably in
    # scoped VMEM on every generation (including v7x's 64 MiB physical VMEM).
    if B * C * HWp * f_item <= (8 << 20):
        tb_auto, tc_auto = B, C
    else:
        tb_auto = 1
        tc_auto = max(8, (((4 << 20) // max(HWp * f_item, 1)) // 8) * 8)
        if tc_auto >= C:
            tc_auto = C
    TB = block_b if block_b is not None else tb_auto
    TC = block_c if block_c is not None else tc_auto

    grid = (pl.cdiv(B, TB), pl.cdiv(C, TC))

    # Explicit scoped-VMEM budget: 2x (double buffering) each block + scratch.
    h_block = TB * J * HWp * h_item
    f_block = TB * TC * HWp * f_item
    o_block = TB * TC * J * f_item
    p_scratch = TB * J * HWp * 4
    vmem_limit = 2 * (h_block + f_block + o_block) + p_scratch + (4 << 20)
    vmem_limit = int(min(max(vmem_limit, 32 << 20), 100 << 20))

    kernel = _make_kp_attention_kernel(act=act, scale=scale)

    out = pl.pallas_call(
        kernel,
        out_shape=jax.ShapeDtypeStruct((B, C, J), features.dtype),
        grid_spec=pltpu.PrefetchScalarGridSpec(
            num_scalar_prefetch=0,
            grid=grid,
            in_specs=[
                # heatmap block index is invariant along the C-tile axis
                # -> DMA'd once per batch block and kept resident.
                pl.BlockSpec((TB, J, HWp), lambda i, c: (i, 0, 0)),
                pl.BlockSpec((TB, TC, HWp), lambda i, c: (i, c, 0)),
            ],
            out_specs=pl.BlockSpec((TB, TC, J), lambda i, c: (i, c, 0)),
            scratch_shapes=[pltpu.VMEM((TB, J, HWp), jnp.float32)],
        ),
        compiler_params=pltpu.CompilerParams(
            # Batch axis parallel (megacore on v7x); the channel-tile axis must
            # stay sequential because the softmax scratch is resident across it.
            dimension_semantics=("parallel", "arbitrary"),
            vmem_limit_bytes=vmem_limit,
        ),
    )(h_flat, f_flat)
    return out


# TODO(synk): use_conv=True branch (1x1 Conv1d = (out_ch x in_ch) matmul + bias
# on the (B, C, J) result) is not exercised by the default config; it could be
# fused as one more MXU matmul on the output block if needed.


def _reference(features, heatmaps, act="softmax", use_scale=False):
    B, J, H, W = heatmaps.shape
    C = features.shape[1]
    h = heatmaps.reshape(B, J, H * W)
    if use_scale:
        h = h * (1.0 / math.sqrt(H * W))
    p = jax.nn.softmax(h, axis=-1) if act == "softmax" else jax.nn.sigmoid(h)
    f = features.reshape(B, C, H * W)
    att = jnp.einsum("bjs,bcs->bjc", p, f)   # (B, J, C)
    return jnp.transpose(att, (0, 2, 1))     # (B, C, J)


def _check(out, ref, tag):
    err = float(jnp.max(jnp.abs(out - ref)))
    # approx reciprocal in the softmax denominator costs ~1e-3 relative.
    assert jnp.allclose(out, ref, atol=2e-2, rtol=2e-2), (tag, err)


if __name__ == "__main__":
    key = jax.random.PRNGKey(0)
    k1, k2, k3, k4 = jax.random.split(key, 4)

    # Small config (default module usage): whole tensor in a single grid step.
    B, C, J, H, W = 2, 4, 8, 16, 16
    features = jax.random.normal(k1, (B, C, H, W), dtype=jnp.float32)
    heatmaps = jax.random.normal(k2, (B, J, H, W), dtype=jnp.float32)

    out = keypoint_attention(features, heatmaps)
    out = jax.block_until_ready(out)
    assert out.shape == (B, C, J), out.shape
    _check(out, _reference(features, heatmaps), "small")

    # Exercise the tiled path: unaligned spatial dim (12*12=144 -> padded to
    # 256), multiple channel tiles, one batch per step, use_scale in-kernel.
    B2, C2, J2, H2, W2 = 3, 24, 8, 12, 12
    features2 = jax.random.normal(k3, (B2, C2, H2, W2), dtype=jnp.float32)
    heatmaps2 = jax.random.normal(k4, (B2, J2, H2, W2), dtype=jnp.float32)

    out2 = keypoint_attention(features2, heatmaps2, use_scale=True,
                              block_b=1, block_c=8)
    out2 = jax.block_until_ready(out2)
    assert out2.shape == (B2, C2, J2), out2.shape
    _check(out2, _reference(features2, heatmaps2, use_scale=True), "tiled")

    print("KERNEL_OK")
</pallas_src>

<mosaic_0001>
module attributes {stable_mosaic.version = 11 : i64} {
  func.func @kernel(%arg0: i32, %arg1: i32, %arg2: memref<2x8x256xf32, #tpu.memory_space<vmem>>, %arg3: memref<2x4x256xf32, #tpu.memory_space<vmem>>, %arg4: memref<2x4x8xf32, #tpu.memory_space<vmem>>, %arg5: memref<2x8x256xf32, #tpu.memory_space<vmem>>) attributes {dimension_semantics = [#tpu.dimension_semantics<parallel>, #tpu.dimension_semantics<arbitrary>], iteration_bounds = array<i64: 1, 1>, scalar_prefetch = 0 : i64, scratch_operands = 1 : i64, tpu.core_type = #tpu.core_type<tc>, window_params = [{transform_indices = @transform_0, window_bounds = array<i64: 2, 8, 256>}, {transform_indices = @transform_1, window_bounds = array<i64: 2, 4, 256>}, {transform_indices = @transform_2, window_bounds = array<i64: 2, 4, 8>}]} {
    %c0_i32 = arith.constant 0 : i32
    %0 = arith.cmpi eq, %arg1, %c0_i32 : i32
    %1 = arith.extui %0 : i1 to i32
    %c0_i32_0 = arith.constant 0 : i32
    %2 = arith.cmpi ne, %1, %c0_i32_0 : i32
    scf.if %2 {
      %c0_9 = arith.constant 0 : index
      %c0_10 = arith.constant 0 : index
      %c0_11 = arith.constant 0 : index
      %7 = vector.load %arg2[%c0_9, %c0_10, %c0_11] : memref<2x8x256xf32, #tpu.memory_space<vmem>>, vector<2x8x256xf32>
      %cst_12 = arith.constant dense<0xFF800000> : vector<2x8xf32>
      %8 = vector.multi_reduction <maximumf>, %7, %cst_12 [2] : vector<2x8x256xf32> to vector<2x8xf32>
      %9 = vector.shape_cast %8 : vector<2x8xf32> to vector<2x8x1xf32>
      %10 = vector.broadcast %9 : vector<2x8x1xf32> to vector<2x8x256xf32>
      %11 = arith.subf %7, %10 : vector<2x8x256xf32>
      %12 = math.exp %11 : vector<2x8x256xf32>
      %cst_13 = arith.constant dense<0.000000e+00> : vector<2x8xf32>
      %13 = vector.multi_reduction <add>, %12, %cst_13 [2] : vector<2x8x256xf32> to vector<2x8xf32>
      %14 = vector.shape_cast %13 : vector<2x8xf32> to vector<2x8x1xf32>
      %15 = tpu.reciprocal %14 {approx = true} : vector<2x8x1xf32> -> vector<2x8x1xf32>
      %16 = vector.broadcast %15 : vector<2x8x1xf32> to vector<2x8x256xf32>
      %17 = arith.mulf %12, %16 : vector<2x8x256xf32>
      %c0_14 = arith.constant 0 : index
      %c0_15 = arith.constant 0 : index
      %c0_16 = arith.constant 0 : index
      %18 = vector.load %arg5[%c0_14, %c0_15, %c0_16] : memref<2x8x256xf32, #tpu.memory_space<vmem>>, vector<2x8x256xf32>
      tpu.vector_store %arg5[%c0_14, %c0_15, %c0_16], %17 {strides = array<i32>} : memref<2x8x256xf32, #tpu.memory_space<vmem>>, vector<2x8x256xf32>,
    } else {
    }
    %c0 = arith.constant 0 : index
    %c0_1 = arith.constant 0 : index
    %c0_2 = arith.constant 0 : index
    %3 = vector.load %arg3[%c0, %c0_1, %c0_2] : memref<2x4x256xf32, #tpu.memory_space<vmem>>, vector<2x4x256xf32>
    %c0_3 = arith.constant 0 : index
    %c0_4 = arith.constant 0 : index
    %c0_5 = arith.constant 0 : index
    %4 = vector.load %arg5[%c0_3, %c0_4, %c0_5] : memref<2x8x256xf32, #tpu.memory_space<vmem>>, vector<2x8x256xf32>
    %cst = arith.constant dense<0.000000e+00> : vector<2x4x8xf32>
    %5 = tpu.matmul %3, %4, %cst {dimension_numbers = #tpu.dot_dimension_numbers<[2], [2], [1], [1], [0, 0, 0, 1, 1, 1], [0], [0]>} : vector<2x4x256xf32>, vector<2x8x256xf32>, vector<2x4x8xf32> -> vector<2x4x8xf32>
    %c0_6 = arith.constant 0 : index
    %c0_7 = arith.constant 0 : index
    %c0_8 = arith.constant 0 : index
    %6 = vector.load %arg4[%c0_6, %c0_7, %c0_8] : memref<2x4x8xf32, #tpu.memory_space<vmem>>, vector<2x4x8xf32>
    tpu.vector_store %arg4[%c0_6, %c0_7, %c0_8], %5 {strides = array<i32>} : memref<2x4x8xf32, #tpu.memory_space<vmem>>, vector<2x4x8xf32>,
    return
  }
  func.func @transform_0(%arg0: i32, %arg1: i32) -> (i32, i32, i32) {
    %c0_i32 = arith.constant 0 : i32
    %c0_i32_0 = arith.constant 0 : i32
    %c0_i32_1 = arith.constant 0 : i32
    return %arg0, %c0_i32, %c0_i32_0 : i32, i32, i32
  }
  func.func @transform_1(%arg0: i32, %arg1: i32) -> (i32, i32, i32) {
    %c0_i32 = arith.constant 0 : i32
    %c0_i32_0 = arith.constant 0 : i32
    return %arg0, %arg1, %c0_i32 : i32, i32, i32
  }
  func.func @transform_2(%arg0: i32, %arg1: i32) -> (i32, i32, i32) {
    %c0_i32 = arith.constant 0 : i32
    %c0_i32_0 = arith.constant 0 : i32
    return %arg0, %arg1, %c0_i32 : i32, i32, i32
  }
}

</mosaic_0001>

<bundles_post_ra>
// kernel: tpu_custom_call.1
= control target key start
LH: loop header
LB: loop body
LE: loop exit
PB: predicated region body
PF: predicated region fallthrough
CT: control target
= control target key end

     0   :  { %7 = vsyncpa [#allocation4], 0  ;;  %s339_s0 = inlined_call_operand.hbm [shape: f32[2,8,256], index: 0, kind: input, shape index: {}]   ;;  %s340_s1 = inlined_call_operand.hbm [shape: f32[2,4,256], index: 1, kind: input, shape index: {}]   ;;  %s341_s2 = inlined_call_operand.hbm [shape: f32[2,4,8], index: 2, kind: output, shape index: {}]  }
   0x1   :  { %8 = vsyncpa [#allocation7], 0 }
   0x2   :  { %9 = vsyncpa [#allocation5], 0  ;;  %s14_s11 = sshll.u32 %s339_s0, 4  ;;  %s306_s12 = smov [#allocation3]   ;;  %s15_s11 = int_to_ptr.hbm [resolvable:$true] %s14_s11 }
   0x3   :  { %s16_s13 = sshll.u32 %s306_s12, 4  ;;  %s27_s16 = sshll.u32 %s340_s1, 4  ;;  %s17_s13 = int_to_ptr.vmem [resolvable:$true] %s16_s13  ;;  %s28_s16 = int_to_ptr.hbm [resolvable:$true] %s27_s16 }
   0x4   :  { %s307_s17 = smov 256   ;;  %s308_s18 = smov 16  }
   0x5   :  { %22 = dma.hbm_to_vmem [thread:$0]  %s15_s11, 512, %s17_s13, [#allocation4], %s307_s17, %s307_s17, %s308_s18  }
   0x6   :  { %s309_s19 = smov [#allocation6]   ;;  %s310_s21 = smov 128  }
   0x7   :  { %s29_s20 = sshll.u32 %s309_s19, 4  ;;  %s311_s22 = smov 8   ;;  %s30_s20 = int_to_ptr.vmem [resolvable:$true] %s29_s20 }
   0x8   :  { %35 = dma.hbm_to_vmem [thread:$0]  %s28_s16, 256, %s30_s20, [#allocation7], %s310_s21, %s310_s21, %s311_s22  }
   0x9   :  { %300 = dma.done.wait [#allocation4], 512  }
   0xa   :  { %301 = vsyncadd [#allocation4], 4294966784 }
   0xb   :  { %302 = dma.done.wait [#allocation7], 256  }
   0xc   :  { %303 = vsyncadd [#allocation7], 4294967040  ;;  %v50_v0 = vld [vmem:[#allocation3 + $0x10] sm:$0xff]  ;;  %v51_v1 = vld [vmem:[#allocation3 + $0x18] sm:$0xff]  ;;  %s312_s0 = smov [#allocation8]   ;;  %s193_s25 = sshll.u32 %s341_s2, 4  ;;  %s194_s25 = int_to_ptr.hbm [resolvable:$true] %s193_s25 }
   0xd   :  { %v55_v2 = vmax.f32 %v50_v0, %v51_v1  ;;  %v48_v3 = vld [vmem:[#allocation3] sm:$0xff]  ;;  %v49_v4 = vld [vmem:[#allocation3 + $0x8] sm:$0xff]  ;;  %s191_s1 = sshll.u32 %s312_s0, 4  ;;  %vm184_vm0 = vcmask 60416   ;;  %s313_s26 = smov 64   ;;  %s192_s1 = int_to_ptr.vmem [resolvable:$true] %s191_s1 }
   0xe   :  { %v52_v5 = vmax.f32 %v48_v3, %v49_v4  ;;  %v86_v22 = vld [vmem:[#allocation6] sm:$0xff]  ;;  %v87_v23 = vld [vmem:[#allocation6 + $0x8] sm:$0xff]  ;;  %s314_s27 = smov 4  }
   0xf   :  { %56 = vmax.xlane.f32.xlu0 %v55_v2  ;;  %93 = vst [vmem:[#allocation1] ss:$2 sm:$0xff] %v86_v22 }
  0x16   :  { %v94_v24 = vld.sshfl [vmem:[#allocation1] sm:$0xff pattern:$0x75316420]  ;;  %v95_v25 = vld.sshfl [vmem:[#allocation1 + $0x8] sm:$0xff pattern:$0x75316420] }
  0x17   :  { %53 = vmax.xlane.f32.xlu0 %v52_v5  ;;  %139 = vst [vmem:[#allocation1] ss:$2 sm:$0xff] %v87_v23 }
  0x1e   :  { %v140_v31 = vld.sshfl [vmem:[#allocation1] sm:$0xff pattern:$0x75316420]  ;;  %v141_v32 = vld.sshfl [vmem:[#allocation1 + $0x8] sm:$0xff pattern:$0x75316420] }
  0x82   :  { %v57_v6 = vpop.xlane.xlu0 %56 }
  0x83   :  { %v60_v7 = vsub.f32 %v50_v0, %v57_v6  ;;  %v61_v8 = vsub.f32 %v51_v1, %v57_v6 }
  0x85   :  { %v66_v9 = vmul.f32 1.442695, %v60_v7  ;;  %v68_v10 = vmul.f32 1.442695, %v61_v8 }
  0x87   :  { %216 = vpow2.f32 %v66_v9 }
  0x88   :  { %218 = vpow2.f32 %v68_v10 }
  0x8a   :  { %v54_v11 = vpop.xlane.xlu0 %53 }
  0x8b   :  { %v58_v12 = vsub.f32 %v48_v3, %v54_v11  ;;  %v59_v13 = vsub.f32 %v49_v4, %v54_v11 }
  0x8d   :  { %v217_v14 = vpop.eup %216  ;;  %v62_v15 = vmul.f32 1.442695, %v58_v12  ;;  %v64_v16 = vmul.f32 1.442695, %v59_v13 }
  0x8e   :  { %v219_v17 = vpop.eup %218 }
  0x8f   :  { %220 = vpow2.f32 %v62_v15  ;;  %v73_v18 = vadd.f32 %v219_v17, %v217_v14 }
  0x90   :  { %222 = vpow2.f32 %v64_v16 }
  0x91   :  { %74 = vadd.xlane.f32.xlu1 %v73_v18 }
  0x95   :  { %v221_v19 = vpop.eup %220 }
  0x96   :  { %v223_v20 = vpop.eup %222 }
  0x97   :  { %v70_v21 = vadd.f32 %v223_v20, %v221_v19 }
  0x99   :  { %71 = vadd.xlane.f32.xlu1 %v70_v21 }
 0x104   :  { %v75_v26 = vpop.xlane.xlu1 %74 }
 0x105   :  { %224 = vrcp.f32 %v75_v26 }
 0x10b   :  { %v225_v27 = vpop.eup %224 }
 0x10c   :  { %v72_v28 = vpop.xlane.xlu1 %71  ;;  %v80_v29 = vmul.f32 %v225_v27, %v217_v14  ;;  %v81_v30 = vmul.f32 %v225_v27, %v219_v17 }
 0x10d   :  { %226 = vrcp.f32 %v72_v28 }
 0x10e   :  { %159 = vmatpush.xpose.msra.mxu2 %v80_v29  ;;  %179 = vmatpush.xpose.msra.mxu3 %v81_v30 }
 0x111   :  { %160 = vmatmul.f32.vlgmr.msra.gmra.mxu2 %v140_v31  ;;  %180 = vmatmul.f32.vlgmr.msra.gmra.mxu3 %v141_v32 }
 0x113   :  { %v227_v33 = vpop.eup %226 }
 0x114   :  { %v78_v34 = vmul.f32 %v227_v33, %v221_v19  ;;  %v79_v35 = vmul.f32 %v227_v33, %v223_v20 }
 0x116   :  { %113 = vmatpush.xpose.msra.mxu0 %v78_v34  ;;  %133 = vmatpush.xpose.msra.mxu1 %v79_v35 }
 0x119   :  { %114 = vmatmul.f32.vlgmr.msra.gmra.mxu0 %v94_v24  ;;  %134 = vmatmul.f32.vlgmr.msra.gmra.mxu1 %v95_v25 }
 0x194   :  { %v161_v36 = vpop.f32.mrf.mxu2  ;;  %v181_v37 = vpop.f32.mrf.mxu3 }
 0x195   :  { %v182_v38 = vadd.f32 %v181_v37, %v161_v36 }
 0x196   :  { %v115_v39 = vpop.f32.mrf.mxu0  ;;  %v135_v40 = vpop.f32.mrf.mxu1 }
 0x197   :  { %v136_v41 = vadd.f32 %v135_v40, %v115_v39  ;;  %186 = vst.msk [vmem:[#allocation8 + $0x4] sm:$0xf] %vm184_vm0, %v182_v38 }
 0x199   :  { %185 = vst.msk [vmem:[#allocation8] sm:$0xf] %vm184_vm0, %v136_v41 }
 0x19a   :  { %199 = dma.vmem_to_hbm [thread:$0]  %s192_s1, 128, %s194_s25, [#allocation5], %s313_s26, %s313_s26, %s314_s27  }
 0x19b   :  { %304 = dma.done.wait [#allocation5], 128  }
 0x19c   :  { %305 = vsyncadd [#allocation5], 4294967168 }
 0x19d   :  { %204 = vsyncpa [#allocation4], 1 }
 0x19e   :  { %205 = vsyncpa [#allocation7], 1 }
 0x19f   :  { %206 = vsyncpa [#allocation5], 1 }

</bundles_post_ra>
